<compile_context>
chip_gen: v7x
topology: tpu7x:2x2x1
jax: 0.10.0
libtpu: 0.0.40
codegen_flags: <defaults>
</compile_context>

<pallas_src>
import jax
import jax.numpy as jnp
from jax.experimental import pallas as pl
from jax.experimental.pallas import tpu as pltpu

LANE = 128                    # TPU lane width; all feature dims zero-padded to 128
MAX_BLOCK_M = 1024            # row-tile cap (per-step VMEM footprint stays << 32 MiB)
VMEM_LIMIT = 32 * 1024 * 1024 # raise v5e's 16 MiB default scoped VMEM; matches v6e/v7x default


# -------------------------------------------------------------------------
# helpers
# -------------------------------------------------------------------------
def _round_up(x, m):
    return ((x + m - 1) // m) * m


def _pad_last(x):
    d = x.shape[-1]
    dp = _round_up(d, LANE)
    if dp == d:
        return x
    return jnp.pad(x, [(0, 0)] * (x.ndim - 1) + [(0, dp - d)])


def _row_tile(m):
    block_m = min(_round_up(max(m, 1), 16), MAX_BLOCK_M)
    m_pad = _round_up(m, block_m)
    return block_m, m_pad


def _pad_rows(x, m_pad):
    m = x.shape[0]
    return x if m == m_pad else jnp.pad(x, ((0, m_pad - m), (0, 0)))


# -------------------------------------------------------------------------
# Pallas kernels
# -------------------------------------------------------------------------
def _pocket_kernel(x_ref, w_ref, b_ref, o_ref):
    """pocket_embedder Linear + residual 2-layer MLP (pocket_encoder stand-in).
    Weights stacked as (3*128,128) bf16, biases as (8,128) f32."""
    def mm(x, k):
        return jnp.dot(x.astype(jnp.bfloat16), w_ref[k * LANE:(k + 1) * LANE, :],
                       preferred_element_type=jnp.float32)

    def bias(k):
        return b_ref[k:k + 1, :]

    h = mm(x_ref[...].astype(jnp.float32), 0) + bias(0)
    t = jnp.maximum(mm(h, 1) + bias(1), 0.0)
    h = h + mm(t, 2) + bias(2)
    o_ref[...] = h.astype(o_ref.dtype)


def _node_edge_kernel(hn_ref, ctx_ref, pos_ref, he_ref, w_ref, b_ref,
                      pred_node_ref, pred_pos_ref, pred_edge_ref):
    """Node path (ctx injection + residual denoiser MLP + packed pos-head/decoder)
    AND edge path (residual denoiser MLP + symmetric sum + decoder), one call.
    Weights stacked as (8*128,128) bf16; biases as (16,128) f32.
    Packed matmul W(2): cols [0:node_dim] = node_dec_1, cols [125:128] = pos_head."""
    f32 = jnp.float32

    def mm(x, k):
        return jnp.dot(x.astype(jnp.bfloat16), w_ref[k * LANE:(k + 1) * LANE, :],
                       preferred_element_type=f32)

    def bias(k):
        return b_ref[k:k + 1, :]

    # ---- node path -------------------------------------------------------
    # TODO(synk): the real denoiser (ContextNodeEdgeNet with edge_index message
    # passing & pocket cross-attention) is an external module; stand-in =
    # pooled-context injection + residual MLP.
    hin = hn_ref[...].astype(f32)
    x = hin + ctx_ref[...].astype(f32)                     # ctx is (1,128) or (block_m,128)
    t = jnp.maximum(mm(x, 0) + bias(0), 0.0)
    h_node = hin + mm(t, 1) + bias(1)
    mixed = mm(h_node, 2)                                   # dec1 pre-act @ lanes [0:node_dim],
                                                            # pos delta    @ lanes [125:128]
    d = jnp.maximum(mixed + bias(2), 0.0)                   # bias(2)=dec1 bias; pos lanes harmless
    pred_node_ref[...] = (mm(d, 3) + bias(3)).astype(pred_node_ref.dtype)
    pred_pos_ref[...] = (pos_ref[...].astype(f32) + mixed + bias(4)).astype(pred_pos_ref.dtype)

    # ---- edge path (halfedges de-duplicated) ------------------------------
    # TODO(synk): with the real ContextNodeEdgeNet both halfedge directions
    # differ; here they are identical so the symmetric sum is 2*h.
    xe = he_ref[...].astype(f32)
    te = jnp.maximum(mm(xe, 4) + bias(5), 0.0)
    he = xe + mm(te, 5) + bias(6)
    s = he + he
    de = jnp.maximum(mm(s, 6) + bias(7), 0.0)
    pred_edge_ref[...] = (mm(de, 7) + bias(8)).astype(pred_edge_ref.dtype)


# -------------------------------------------------------------------------
# Deterministic parameter init (shapes implied by PMAsymDenoiser.__init__).
# Weights are padded & stacked into lane-dense bf16 slabs ONCE here.
# -------------------------------------------------------------------------
def init_params(key, *, num_node_types, num_edge_types, pocket_in_dim,
                pocket_dim, node_dim, edge_dim):
    assert max(pocket_in_dim, pocket_dim, node_dim, edge_dim,
               num_node_types, num_edge_types) <= LANE, "single 128-lane tile design"
    assert node_dim <= LANE - 3, "packed pos-head/node-decoder matmul uses the last 3 lanes"

    def dense(k, i, o, scale=None):
        s = scale if scale is not None else (1.0 / float(i) ** 0.5)
        kw, kb = jax.random.split(k)
        w = jax.random.normal(kw, (i, o), jnp.float32) * s
        b = jax.random.normal(kb, (o,), jnp.float32) * 0.01
        return w, b

    def pad_w(w, col_off=0):
        out = jnp.zeros((LANE, LANE), jnp.float32)
        return out.at[:w.shape[0], col_off:col_off + w.shape[1]].set(w)

    def pad_b(b, col_off=0):
        return jnp.zeros((LANE,), jnp.float32).at[col_off:col_off + b.shape[0]].set(b)

    keys = jax.random.split(key, 16)
    node_emb_dim = node_dim - 2      # node_dim - 2 - len(addition_node_features=[])
    edge_emb_dim = edge_dim - 2
    p = {}
    p["node_emb"] = jax.random.normal(keys[0], (num_node_types, node_emb_dim), jnp.float32) * 0.1
    p["edge_emb"] = jax.random.normal(keys[1], (num_edge_types, edge_emb_dim), jnp.float32) * 0.1

    # pocket path: embedder + residual MLP (pocket_encoder stand-in), one bf16 slab
    w_emb, b_emb = dense(keys[2], pocket_in_dim, pocket_dim)
    w_e1, b_e1 = dense(keys[3], pocket_dim, pocket_dim)
    w_e2, b_e2 = dense(keys[4], pocket_dim, pocket_dim)
    p["pocket_w"] = jnp.concatenate([pad_w(w_emb), pad_w(w_e1), pad_w(w_e2)],
                                    axis=0).astype(jnp.bfloat16)          # (384,128)
    p["pocket_b"] = (jnp.zeros((8, LANE), jnp.float32)
                     .at[0].set(pad_b(b_emb)).at[1].set(pad_b(b_e1)).at[2].set(pad_b(b_e2)))

    # pooled-context projection (tiny per-graph matmul, applied in the wrapper)
    w_ctx, b_ctx = dense(keys[5], pocket_dim, node_dim)
    p["ctx_w"] = pad_w(w_ctx)                                             # (128,128) f32
    p["ctx_b"] = pad_b(b_ctx).reshape(1, LANE)

    # node path
    w_dn1, b_dn1 = dense(keys[6], node_dim, node_dim)
    w_dn2, b_dn2 = dense(keys[7], node_dim, node_dim)
    w_pos, b_pos = dense(keys[10], node_dim, 3, scale=0.1)
    w_nd1, b_nd1 = dense(keys[11], node_dim, node_dim)                    # MLP hidden
    w_nd2, b_nd2 = dense(keys[12], node_dim, num_node_types)
    w_mix = pad_w(w_nd1) + pad_w(w_pos, col_off=LANE - 3)                 # shared-operand pack

    # edge path
    w_de1, b_de1 = dense(keys[8], edge_dim, edge_dim)
    w_de2, b_de2 = dense(keys[9], edge_dim, edge_dim)
    w_ed1, b_ed1 = dense(keys[13], edge_dim, edge_dim)
    w_ed2, b_ed2 = dense(keys[14], edge_dim, num_edge_types)

    p["ne_w"] = jnp.concatenate(
        [pad_w(w_dn1), pad_w(w_dn2), w_mix, pad_w(w_nd2),
         pad_w(w_de1), pad_w(w_de2), pad_w(w_ed1), pad_w(w_ed2)],
        axis=0).astype(jnp.bfloat16)                                      # (1024,128)
    bias_rows = jnp.stack(
        [pad_b(b_dn1), pad_b(b_dn2), pad_b(b_nd1), pad_b(b_nd2),
         pad_b(b_pos, col_off=LANE - 3),
         pad_b(b_de1), pad_b(b_de2), pad_b(b_ed1), pad_b(b_ed2)], axis=0) # (9,128)
    p["ne_b"] = jnp.pad(bias_rows, ((0, 16 - bias_rows.shape[0]), (0, 0)))  # (16,128)

    p["dims"] = {"num_node_types": num_node_types, "num_edge_types": num_edge_types}
    return p


# -------------------------------------------------------------------------
# Forward pass (mirrors PMAsymDenoiser.forward)
# -------------------------------------------------------------------------
def pma_asym_denoiser_forward(p, batch, num_graphs=1):
    dims = p["dims"]
    dt = jnp.float32
    pos_in = batch["pos_in"].astype(dt)

    # embeddings + extras (JAX glue: gather / concat), padded to 128 lanes once
    h_node_in = jnp.take(p["node_emb"], batch["node_in"], axis=0)
    h_halfedge_in = jnp.take(p["edge_emb"], batch["halfedge_in"], axis=0)
    node_extra = jnp.stack([batch["fixed_node"], batch["fixed_pos"]], axis=1).astype(dt)
    halfedge_extra = jnp.stack([batch["fixed_halfedge"], batch["fixed_halfdist"]], axis=1).astype(dt)
    h_node_in = _pad_last(jnp.concatenate([h_node_in, node_extra], axis=-1))            # (N,128)
    h_halfedge_in = _pad_last(jnp.concatenate([h_halfedge_in, halfedge_extra], axis=-1))  # (E,128)
    N = h_node_in.shape[0]
    E = h_halfedge_in.shape[0]
    # pos lives in the LAST 3 lanes so it lines up with the packed pos-head columns
    pos_pad = jnp.zeros((N, LANE), dt).at[:, LANE - 3:].set(pos_in)

    # --- pocket path: one fused pallas_call --------------------------------------
    # TODO(synk): pocket_encoder (ContextNodeEdgeNet / GAEncoder over
    # pocket_knn_edge_index) is an external module; stand-in = residual per-atom MLP.
    x_pocket = _pad_last(batch["pocket_atom_feature"].astype(dt))
    P = x_pocket.shape[0]
    block_p, p_pad = _row_tile(P)
    h_pocket = pl.pallas_call(
        _pocket_kernel,
        out_shape=jax.ShapeDtypeStruct((p_pad, LANE), dt),
        grid=(p_pad // block_p,),
        in_specs=[pl.BlockSpec((block_p, LANE), lambda i: (i, 0)),
                  pl.BlockSpec(p["pocket_w"].shape, lambda i: (0, 0)),
                  pl.BlockSpec(p["pocket_b"].shape, lambda i: (0, 0))],
        out_specs=pl.BlockSpec((block_p, LANE), lambda i: (i, 0)),
        compiler_params=pltpu.CompilerParams(
            dimension_semantics=("parallel",), vmem_limit_bytes=VMEM_LIMIT),
    )(_pad_rows(x_pocket, p_pad), p["pocket_w"], p["pocket_b"])[:P]

    # pooled pocket context, projected ONCE per graph (tiny matmul, plain JAX)
    seg = batch["pocket_pos_batch"]
    ctx_sum = jax.ops.segment_sum(h_pocket, seg, num_segments=num_graphs)
    ctx_cnt = jax.ops.segment_sum(jnp.ones((P, 1), dt), seg, num_segments=num_graphs)
    ctx_mean = ctx_sum / jnp.maximum(ctx_cnt, 1.0)                                      # (G,128)
    ctx_graph = (jnp.dot(ctx_mean, p["ctx_w"], preferred_element_type=jnp.float32)
                 + p["ctx_b"]).astype(dt)                                               # (G,128)

    # --- node + edge paths: ONE fused pallas_call --------------------------------
    M = max(N, E)
    block_m, m_pad = _row_tile(M)
    hn = _pad_rows(h_node_in, m_pad)
    pos_rows = _pad_rows(pos_pad, m_pad)
    he = _pad_rows(h_halfedge_in, m_pad)

    if num_graphs == 1:
        # broadcast the single (1,128) graph-context row inside the kernel:
        # no (N,128) ctx_node materialization / HBM round-trip.
        ctx_arr = ctx_graph
        ctx_spec = pl.BlockSpec((1, LANE), lambda i: (0, 0))
    else:
        ctx_arr = _pad_rows(jnp.take(ctx_graph, batch["node_type_batch"], axis=0), m_pad)
        ctx_spec = pl.BlockSpec((block_m, LANE), lambda i: (i, 0))

    pred_node_pad, pred_pos_pad, pred_edge_pad = pl.pallas_call(
        _node_edge_kernel,
        out_shape=tuple(jax.ShapeDtypeStruct((m_pad, LANE), dt) for _ in range(3)),
        grid=(m_pad // block_m,),
        in_specs=[pl.BlockSpec((block_m, LANE), lambda i: (i, 0)),   # h_node_in
                  ctx_spec,                                          # ctx (graph or per-node)
                  pl.BlockSpec((block_m, LANE), lambda i: (i, 0)),   # pos (last 3 lanes)
                  pl.BlockSpec((block_m, LANE), lambda i: (i, 0)),   # h_halfedge_in
                  pl.BlockSpec(p["ne_w"].shape, lambda i: (0, 0)),   # stacked weights (bf16)
                  pl.BlockSpec(p["ne_b"].shape, lambda i: (0, 0))],  # stacked biases (f32)
        out_specs=tuple(pl.BlockSpec((block_m, LANE), lambda i: (i, 0)) for _ in range(3)),
        compiler_params=pltpu.CompilerParams(
            dimension_semantics=("parallel",), vmem_limit_bytes=VMEM_LIMIT),
    )(hn, ctx_arr, pos_rows, he, p["ne_w"], p["ne_b"])

    return {
        "pred_node": pred_node_pad[:N, :dims["num_node_types"]],
        "pred_pos": pred_pos_pad[:N, LANE - 3:],
        "pred_halfedge": pred_edge_pad[:E, :dims["num_edge_types"]],
    }


# -------------------------------------------------------------------------
if __name__ == "__main__":
    key = jax.random.PRNGKey(0)
    num_node_types, num_edge_types = 8, 4
    pocket_in_dim, pocket_dim = 24, 32
    node_dim, edge_dim = 32, 16
    N, E, P = 16, 24, 32  # ligand nodes, half-edges, pocket atoms

    kparam, kdata = jax.random.split(key)
    params = init_params(kparam,
                         num_node_types=num_node_types, num_edge_types=num_edge_types,
                         pocket_in_dim=pocket_in_dim, pocket_dim=pocket_dim,
                         node_dim=node_dim, edge_dim=edge_dim)

    ks = jax.random.split(kdata, 11)
    batch = {
        "pos_in": jax.random.normal(ks[0], (N, 3), jnp.float32),
        "node_in": jax.random.randint(ks[1], (N,), 0, num_node_types),
        "halfedge_in": jax.random.randint(ks[2], (E,), 0, num_edge_types),
        "fixed_node": jax.random.bernoulli(ks[3], 0.5, (N,)).astype(jnp.float32),
        "fixed_pos": jax.random.bernoulli(ks[4], 0.5, (N,)).astype(jnp.float32),
        "fixed_halfedge": jax.random.bernoulli(ks[5], 0.5, (E,)).astype(jnp.float32),
        "fixed_halfdist": jax.random.bernoulli(ks[6], 0.5, (E,)).astype(jnp.float32),
        "halfedge_index": jax.random.randint(ks[7], (2, E), 0, N),
        "pocket_atom_feature": jax.random.normal(ks[8], (P, pocket_in_dim), jnp.float32),
        "pocket_pos": jax.random.normal(ks[9], (P, 3), jnp.float32),
        "pocket_knn_edge_index": jax.random.randint(ks[10], (2, 2 * P), 0, P),
        "node_type_batch": jnp.zeros((N,), jnp.int32),
        "pocket_pos_batch": jnp.zeros((P,), jnp.int32),
    }

    out = pma_asym_denoiser_forward(params, batch)
    jax.block_until_ready(out)
    assert out["pred_node"].shape == (N, num_node_types)
    assert out["pred_pos"].shape == (N, 3)
    assert out["pred_halfedge"].shape == (E, num_edge_types)
    assert all(bool(jnp.all(jnp.isfinite(v))) for v in out.values())
    print("KERNEL_OK")
</pallas_src>

<mosaic_0001>
module attributes {stable_mosaic.version = 11 : i64} {
  func.func @_pocket_kernel(%arg0: i32, %arg1: memref<32x128xf32, #tpu.memory_space<vmem>>, %arg2: memref<384x128xbf16, #tpu.memory_space<vmem>>, %arg3: memref<8x128xf32, #tpu.memory_space<vmem>>, %arg4: memref<32x128xf32, #tpu.memory_space<vmem>>) attributes {dimension_semantics = [#tpu.dimension_semantics<parallel>], iteration_bounds = array<i64: 1>, scalar_prefetch = 0 : i64, scratch_operands = 0 : i64, tpu.core_type = #tpu.core_type<tc>, window_params = [{transform_indices = @transform_0, window_bounds = array<i64: 32, 128>}, {pipeline_mode = #tpu.pipeline_mode<synchronous>, transform_indices = @transform_1, window_bounds = array<i64: 384, 128>}, {pipeline_mode = #tpu.pipeline_mode<synchronous>, transform_indices = @transform_2, window_bounds = array<i64: 8, 128>}, {transform_indices = @transform_3, window_bounds = array<i64: 32, 128>}]} {
    %c0 = arith.constant 0 : index
    %c0_0 = arith.constant 0 : index
    %0 = vector.load %arg1[%c0, %c0_0] : memref<32x128xf32, #tpu.memory_space<vmem>>, vector<32x128xf32>
    %1 = arith.truncf %0 : vector<32x128xf32> to vector<32x128xbf16>
    %c0_1 = arith.constant 0 : index
    %c0_2 = arith.constant 0 : index
    %2 = vector.load %arg2[%c0_1, %c0_2] : memref<384x128xbf16, #tpu.memory_space<vmem>>, vector<128x128xbf16>
    %cst = arith.constant dense<0.000000e+00> : vector<32x128xf32>
    %3 = tpu.matmul %1, %2, %cst {dimension_numbers = #tpu.dot_dimension_numbers<[1], [0], [0], [1], [0, 0, 1, 1], [], []>} : vector<32x128xbf16>, vector<128x128xbf16>, vector<32x128xf32> -> vector<32x128xf32>
    %c0_3 = arith.constant 0 : index
    %c0_4 = arith.constant 0 : index
    %4 = vector.load %arg3[%c0_3, %c0_4] : memref<8x128xf32, #tpu.memory_space<vmem>>, vector<1x128xf32>
    %5 = vector.broadcast %4 : vector<1x128xf32> to vector<32x128xf32>
    %6 = arith.addf %3, %5 : vector<32x128xf32>
    %7 = arith.truncf %6 : vector<32x128xf32> to vector<32x128xbf16>
    %c128 = arith.constant 128 : index
    %c0_5 = arith.constant 0 : index
    %8 = vector.load %arg2[%c128, %c0_5] : memref<384x128xbf16, #tpu.memory_space<vmem>>, vector<128x128xbf16>
    %cst_6 = arith.constant dense<0.000000e+00> : vector<32x128xf32>
    %9 = tpu.matmul %7, %8, %cst_6 {dimension_numbers = #tpu.dot_dimension_numbers<[1], [0], [0], [1], [0, 0, 1, 1], [], []>} : vector<32x128xbf16>, vector<128x128xbf16>, vector<32x128xf32> -> vector<32x128xf32>
    %c1 = arith.constant 1 : index
    %c0_7 = arith.constant 0 : index
    %10 = vector.load %arg3[%c1, %c0_7] : memref<8x128xf32, #tpu.memory_space<vmem>>, vector<1x128xf32>
    %11 = vector.broadcast %10 : vector<1x128xf32> to vector<32x128xf32>
    %12 = arith.addf %9, %11 : vector<32x128xf32>
    %cst_8 = arith.constant 0.000000e+00 : f32
    %13 = vector.broadcast %cst_8 : f32 to vector<32x128xf32>
    %14 = arith.maximumf %12, %13 : vector<32x128xf32>
    %15 = arith.truncf %14 : vector<32x128xf32> to vector<32x128xbf16>
    %c256 = arith.constant 256 : index
    %c0_9 = arith.constant 0 : index
    %16 = vector.load %arg2[%c256, %c0_9] : memref<384x128xbf16, #tpu.memory_space<vmem>>, vector<128x128xbf16>
    %cst_10 = arith.constant dense<0.000000e+00> : vector<32x128xf32>
    %17 = tpu.matmul %15, %16, %cst_10 {dimension_numbers = #tpu.dot_dimension_numbers<[1], [0], [0], [1], [0, 0, 1, 1], [], []>} : vector<32x128xbf16>, vector<128x128xbf16>, vector<32x128xf32> -> vector<32x128xf32>
    %18 = arith.addf %6, %17 : vector<32x128xf32>
    %c2 = arith.constant 2 : index
    %c0_11 = arith.constant 0 : index
    %19 = vector.load %arg3[%c2, %c0_11] : memref<8x128xf32, #tpu.memory_space<vmem>>, vector<1x128xf32>
    %20 = vector.broadcast %19 : vector<1x128xf32> to vector<32x128xf32>
    %21 = arith.addf %18, %20 : vector<32x128xf32>
    %c0_12 = arith.constant 0 : index
    %c0_13 = arith.constant 0 : index
    %22 = vector.load %arg4[%c0_12, %c0_13] : memref<32x128xf32, #tpu.memory_space<vmem>>, vector<32x128xf32>
    tpu.vector_store %arg4[%c0_12, %c0_13], %21 {strides = array<i32>} : memref<32x128xf32, #tpu.memory_space<vmem>>, vector<32x128xf32>,
    return
  }
  func.func @transform_0(%arg0: i32) -> (i32, i32) {
    %c0_i32 = arith.constant 0 : i32
    %c0_i32_0 = arith.constant 0 : i32
    return %arg0, %c0_i32 : i32, i32
  }
  func.func @transform_1(%arg0: i32) -> (i32, i32) {
    %c0_i32 = arith.constant 0 : i32
    %c0_i32_0 = arith.constant 0 : i32
    %c0_i32_1 = arith.constant 0 : i32
    return %c0_i32, %c0_i32_0 : i32, i32
  }
  func.func @transform_2(%arg0: i32) -> (i32, i32) {
    %c0_i32 = arith.constant 0 : i32
    %c0_i32_0 = arith.constant 0 : i32
    %c0_i32_1 = arith.constant 0 : i32
    return %c0_i32, %c0_i32_0 : i32, i32
  }
  func.func @transform_3(%arg0: i32) -> (i32, i32) {
    %c0_i32 = arith.constant 0 : i32
    %c0_i32_0 = arith.constant 0 : i32
    return %arg0, %c0_i32 : i32, i32
  }
}

</mosaic_0001>

<bundles_post_ra>
// kernel: tpu_custom_call.1
= control target key start
LH: loop header
LB: loop body
LE: loop exit
PB: predicated region body
PF: predicated region fallthrough
CT: control target
= control target key end

     0   :  { %8 = vsyncpa [#allocation3], 0  ;;  %s778_s0 = inlined_call_operand.hbm [shape: f32[32,128], index: 0, kind: input, shape index: {}]   ;;  %s779_s1 = inlined_call_operand.hbm [shape: bf16[384,128], index: 1, kind: input, shape index: {}]   ;;  %s780_s2 = inlined_call_operand.hbm [shape: f32[8,128], index: 2, kind: input, shape index: {}]   ;;  %s781_s3 = inlined_call_operand.hbm [shape: f32[32,128], index: 3, kind: output, shape index: {}]  }
   0x1   :  { %9 = vsyncpa [#allocation6], 0 }
   0x2   :  { %10 = vsyncpa [#allocation4], 0  ;;  %s696_s12 = smov [#allocation5]   ;;  %s602_s16 = scalar_lea.hbm %s779_s1, 3072 }
   0x3   :  { %s28_s13 = sshll.u32 %s696_s12, 4  ;;  %p603_p0 = scmp.ne.s32.totalorder %s779_s1, %s602_s16  ;;  %s29_s13 = int_to_ptr.vmem [resolvable:$true] %s28_s13 }
   0x4   :  { %p606_p1 = scmp.lt.u32.totalorder %s602_s16, %s779_s1 }
   0x6   :  { %p608_p2 = pnand %p606_p1, %p603_p0 }
   0x8   :  { %611 = shalt.err (!%p608_p2)
}
   0x9   :  { %s612_s21 = scalar_lea.vmem %s29_s13, 3072  ;;  %p617_p4 = scmp.lt.s32.totalorder %s29_s13, %s29_s13 }
   0xa   :  { %p613_p3 = scmp.ne.s32.totalorder %s29_s13, %s612_s21  ;;  %p618_p5 = scmp.lt.s32.totalorder %s612_s21, %s612_s21 }
   0xc   :  { %p619_p6 = por %p618_p5, %p617_p4 }
   0xe   :  { %p620_p7 = pnand %p619_p6, %p613_p3 }
  0x10   :  { %623 = shalt.err (!%p620_p7)
}
  0x11   :  { %s697_s22 = smov 64   ;;  %s698_s23 = smov 4  }
  0x12   :  { %34 = dma.hbm_to_vmem [thread:$0]  %s779_s1, 3072, %s29_s13, [#allocation6], %s697_s22, %s697_s22, %s698_s23  }
  0x13   :  { %s699_s26 = smov [#allocation2]   ;;  %s624_s30 = scalar_lea.hbm %s778_s0, 512 }
  0x14   :  { %s16_s27 = sshll.u32 %s699_s26, 4  ;;  %p625_p8 = scmp.ne.s32.totalorder %s778_s0, %s624_s30  ;;  %s17_s27 = int_to_ptr.vmem [resolvable:$true] %s16_s27 }
  0x15   :  { %p628_p9 = scmp.lt.u32.totalorder %s624_s30, %s778_s0 }
  0x17   :  { %p630_p10 = pnand %p628_p9, %p625_p8 }
  0x19   :  { %633 = shalt.err (!%p630_p10)
}
  0x1a   :  { %s634_s8 = scalar_lea.vmem %s17_s27, 512  ;;  %p639_p12 = scmp.lt.s32.totalorder %s17_s27, %s17_s27 }
  0x1b   :  { %p635_p11 = scmp.ne.s32.totalorder %s17_s27, %s634_s8  ;;  %p640_p13 = scmp.lt.s32.totalorder %s634_s8, %s634_s8 }
  0x1d   :  { %p641_p0 = por %p640_p13, %p639_p12 }
  0x1f   :  { %p642_p1 = pnand %p641_p0, %p635_p11 }
  0x21   :  { %645 = shalt.err (!%p642_p1)
}
  0x22   :  { %s700_s1 = smov 128   ;;  %s701_s9 = smov 8  }
  0x23   :  { %22 = dma.hbm_to_vmem [thread:$0]  %s778_s0, 512, %s17_s27, [#allocation3], %s700_s1, %s700_s1, %s701_s9  }
  0x24   :  { %s702_s12 = smov [#allocation7]   ;;  %s646_s16 = scalar_lea.hbm %s780_s2, 128 }
  0x25   :  { %s41_s13 = sshll.u32 %s702_s12, 4  ;;  %p647_p2 = scmp.ne.s32.totalorder %s780_s2, %s646_s16  ;;  %s42_s13 = int_to_ptr.vmem [resolvable:$true] %s41_s13 }
  0x26   :  { %p650_p3 = scmp.lt.u32.totalorder %s646_s16, %s780_s2 }
  0x28   :  { %p652_p4 = pnand %p650_p3, %p647_p2 }
  0x2a   :  { %655 = shalt.err (!%p652_p4)
}
  0x2b   :  { %s656_s21 = scalar_lea.vmem %s42_s13, 128  ;;  %p661_p6 = scmp.lt.s32.totalorder %s42_s13, %s42_s13 }
  0x2c   :  { %p657_p5 = scmp.ne.s32.totalorder %s42_s13, %s656_s21  ;;  %p662_p7 = scmp.lt.s32.totalorder %s656_s21, %s656_s21 }
  0x2e   :  { %p663_p8 = por %p662_p7, %p661_p6 }
  0x30   :  { %p664_p9 = pnand %p663_p8, %p657_p5 }
  0x32   :  { %667 = shalt.err (!%p664_p9)
}
  0x33   :  { %44 = dma.hbm_to_vmem [thread:$0]  %s780_s2, 128, %s42_s13, [#allocation6]  }
  0x34   :  { %690 = dma.done.wait [#allocation3], 512  }
  0x35   :  { %691 = vsyncadd [#allocation3], 4294966784 }
  0x36   :  { %692 = dma.done.wait [#allocation6], 3200  }
  0x37   :  { %693 = vsyncadd [#allocation6], 4294964096  ;;  %v578_v0 = vld [vmem:[#allocation5] sm:$0xff]   ;;  %v579_v1 = vld [vmem:[#allocation5 + $0x8] sm:$0xff]   ;;  %s703_s2 = smov [#allocation8]  }
  0x38   :  { %510 = vmatprep.subr.bf16.mxu0 %v578_v0  ;;  %v580_v2 = vld [vmem:[#allocation5 + $0x10] sm:$0xff]   ;;  %v581_v3 = vld [vmem:[#allocation5 + $0x18] sm:$0xff]   ;;  %v55_v4 = vld [vmem:[#allocation2] sm:$0xff]  ;;  %s440_s23 = sshll.u32 %s703_s2, 4  ;;  %s441_s23 = int_to_ptr.vmem [resolvable:$true] %s440_s23 }
  0x39   :  { %511 = vmatpush3.bf16.msra.mxu0 %v578_v0  ;;  %v56_v5 = vld [vmem:[#allocation2 + $0x8] sm:$0xff]  ;;  %v586_v7 = vld [vmem:[#allocation5 + $0x40] sm:$0xff]   ;;  %v588_v10 = vld [vmem:[#allocation5 + $0x50] sm:$0xff]   ;;  %s668_s24 = scalar_lea.vmem %s441_s23, 512  ;;  %p673_p11 = scmp.lt.s32.totalorder %s441_s23, %s441_s23 }
  0x3a   :  { %512 = vmatprep.subr.bf16.mxu0 %v579_v1  ;;  %v59_v6 = vpack.c.bf16 %v56_v5, %v55_v4  ;;  %v587_v8 = vld [vmem:[#allocation5 + $0x48] sm:$0xff]   ;;  %v582_v9 = vld [vmem:[#allocation5 + $0x20] sm:$0xff]   ;;  %530 = vmatprep.subr.bf16.mxu1 %v586_v7  ;;  %v589_v12 = vld [vmem:[#allocation5 + $0x58] sm:$0xff]   ;;  %p669_p10 = scmp.ne.s32.totalorder %s441_s23, %s668_s24  ;;  %p674_p12 = scmp.lt.s32.totalorder %s668_s24, %s668_s24 }
  0x3b   :  { %531 = vmatpush3.bf16.msra.mxu1 %v586_v7  ;;  %v583_v11 = vld [vmem:[#allocation5 + $0x28] sm:$0xff]   ;;  %v584_v13 = vld [vmem:[#allocation5 + $0x30] sm:$0xff]   ;;  %v590_v14 = vld [vmem:[#allocation5 + $0x60] sm:$0xff]  }
  0x3c   :  { %526 = vmatprep.mubr.bf16.mxu0 %v59_v6  ;;  %532 = vmatprep.subr.bf16.mxu1 %v587_v8  ;;  %v585_v15 = vld [vmem:[#allocation5 + $0x38] sm:$0xff]   ;;  %v591_v16 = vld [vmem:[#allocation5 + $0x68] sm:$0xff]   ;;  %v57_v17 = vld [vmem:[#allocation2 + $0x10] sm:$0xff]  ;;  %p675_p13 = por %p674_p12, %p673_p11 }
  0x3d   :  { %513 = vmatpush3.bf16.msra.mxu0 %v579_v1  ;;  %v58_v18 = vld [vmem:[#allocation2 + $0x18] sm:$0xff]  ;;  %v592_v20 = vld [vmem:[#allocation5 + $0x70] sm:$0xff]   ;;  %v594_v22 = vld [vmem:[#allocation5 + $0x80] sm:$0xff]  }
  0x3e   :  { %514 = vmatprep.subr.bf16.mxu0 %v580_v2  ;;  %v60_v19 = vpack.c.bf16 %v58_v18, %v57_v17  ;;  %v593_v21 = vld [vmem:[#allocation5 + $0x78] sm:$0xff]   ;;  %v595_v23 = vld [vmem:[#allocation5 + $0x88] sm:$0xff]   ;;  %v596_v24 = vld [vmem:[#allocation5 + $0x90] sm:$0xff]   ;;  %p676_p0 = pnand %p675_p13, %p669_p10 }
  0x3f   :  { %533 = vmatpush3.bf16.msra.mxu1 %v587_v8  ;;  %v597_v25 = vld [vmem:[#allocation5 + $0x98] sm:$0xff]   ;;  %v598_v26 = vld [vmem:[#allocation5 + $0xa0] sm:$0xff]   ;;  %v599_v27 = vld [vmem:[#allocation5 + $0xa8] sm:$0xff]  }
  0x40   :  { %534 = vmatprep.subr.bf16.mxu1 %v588_v10  ;;  %v453_v29 = vld [vmem:[#allocation7] ss:$0 sm:$0xff]  ;;  %v600_v39 = vld [vmem:[#allocation5 + $0xb0] sm:$0xff]   ;;  %v601_v40 = vld [vmem:[#allocation5 + $0xb8] sm:$0xff]  }
  0x41   :  { %515 = vmatpush3.bf16.msra.mxu0 %v580_v2  ;;  %v462_v41 = vld [vmem:[#allocation7 + $0x1] ss:$0 sm:$0xff]  ;;  %v479_v57 = vld [vmem:[#allocation7 + $0x2] ss:$0 sm:$0xff] }
  0x42   :  { %516 = vmatprep.subr.bf16.mxu0 %v581_v3 }
  0x43   :  { %535 = vmatpush3.bf16.msra.mxu1 %v588_v10 }
  0x44   :  { %536 = vmatprep.subr.bf16.mxu1 %v589_v12 }
  0x45   :  { %517 = vmatpush3.bf16.msra.mxu0 %v581_v3 }
  0x46   :  { %518 = vmatprep.subr.bf16.mxu0 %v582_v9 }
  0x47   :  { %537 = vmatpush3.bf16.msra.mxu1 %v589_v12 }
  0x48   :  { %538 = vmatprep.subr.bf16.mxu1 %v590_v14 }
  0x49   :  { %519 = vmatpush3.bf16.msra.mxu0 %v582_v9 }
  0x4a   :  { %520 = vmatprep.subr.bf16.mxu0 %v583_v11 }
  0x4b   :  { %539 = vmatpush3.bf16.msra.mxu1 %v590_v14 }
  0x4c   :  { %540 = vmatprep.subr.bf16.mxu1 %v591_v16 }
  0x4d   :  { %521 = vmatpush3.bf16.msra.mxu0 %v583_v11 }
  0x4e   :  { %522 = vmatprep.subr.bf16.mxu0 %v584_v13 }
  0x4f   :  { %541 = vmatpush3.bf16.msra.mxu1 %v591_v16 }
  0x50   :  { %542 = vmatprep.subr.bf16.mxu1 %v592_v20 }
  0x51   :  { %523 = vmatpush3.bf16.msra.mxu0 %v584_v13 }
  0x52   :  { %524 = vmatprep.subr.bf16.mxu0 %v585_v15 }
  0x53   :  { %543 = vmatpush3.bf16.msra.mxu1 %v592_v20 }
  0x54   :  { %544 = vmatprep.subr.bf16.mxu1 %v593_v21 }
  0x55   :  { %525 = vmatpush3.bf16.msra.mxu0 %v585_v15 }
  0x56   :  { %550 = vmatprep.subr.bf16.mxu0 %v594_v22 }
  0x57   :  { %545 = vmatpush3.bf16.msra.mxu1 %v593_v21 }
  0x58   :  { %527 = vmatmul.mubr.bf16.vlgmr.msra.gmra.mrb[0].mxu0 %v60_v19 }
  0x59   :  { %551 = vmatpush3.bf16.msra.mxu0 %v594_v22 }
  0x5a   :  { %552 = vmatprep.subr.bf16.mxu0 %v595_v23 }
  0x5d   :  { %553 = vmatpush3.bf16.msra.mxu0 %v595_v23 }
  0x5e   :  { %554 = vmatprep.subr.bf16.mxu0 %v596_v24 }
  0x61   :  { %555 = vmatpush3.bf16.msra.mxu0 %v596_v24 }
  0x62   :  { %556 = vmatprep.subr.bf16.mxu0 %v597_v25 }
  0x65   :  { %557 = vmatpush3.bf16.msra.mxu0 %v597_v25 }
  0x66   :  { %558 = vmatprep.subr.bf16.mxu0 %v598_v26 }
  0x69   :  { %559 = vmatpush3.bf16.msra.mxu0 %v598_v26 }
  0x6a   :  { %560 = vmatprep.subr.bf16.mxu0 %v599_v27 }
  0x6d   :  { %561 = vmatpush3.bf16.msra.mxu0 %v599_v27 }
  0x6e   :  { %562 = vmatprep.subr.bf16.mxu0 %v600_v39 }
  0x71   :  { %563 = vmatpush3.bf16.msra.mxu0 %v600_v39 }
  0x72   :  { %564 = vmatprep.subr.bf16.mxu0 %v601_v40 }
  0x75   :  { %565 = vmatpush3.bf16.msra.mxu0 %v601_v40 }
 0x12b   :  { %v528_v28 = vpop.f32.mrb[0].mxu0 }
 0x12c   :  { %v164_v30 = vpop.f32.mrb[1].mxu0  ;;  %v173_v36 = vadd.f32 %v528_v28, %v453_v29 }
 0x12d   :  { %v529_v31 = vpop.f32.mrb[2].mxu0  ;;  %v165_v34 = vadd.f32 %v453_v29, %v164_v30 }
 0x12e   :  { %v176_v32 = vadd.f32 %v529_v31, %v453_v29  ;;  %v167_v33 = vpop.f32.mrb[3].mxu0 }
 0x12f   :  { %v168_v35 = vadd.f32 %v453_v29, %v167_v33 }
 0x130   :  { %v180_v38 = vpack.c.bf16 %v176_v32, %v173_v36 }
 0x131   :  { %v179_v37 = vpack.c.bf16 %v168_v35, %v165_v34 }
 0x133   :  { %546 = vmatprep.mubr.bf16.mxu1 %v179_v37 }
 0x134   :  { %547 = vmatmul.mubr.bf16.vlgmr.msra.gmra.mrb[0].mxu1 %v180_v38 }
 0x207   :  { %v548_v42 = vpop.f32.mrb[0].mxu1 }
 0x208   :  { %v293_v43 = vadd.f32 %v548_v42, %v462_v41  ;;  %v284_v44 = vpop.f32.mrb[1].mxu1 }
 0x209   :  { %v285_v45 = vadd.f32 %v462_v41, %v284_v44  ;;  %v549_v46 = vpop.f32.mrb[2].mxu1 }
 0x20a   :  { %v296_v47 = vadd.f32 %v549_v46, %v462_v41  ;;  %v287_v48 = vpop.f32.mrb[3].mxu1  ;;  %v301_v50 = vmax.f32 %v293_v43, 0.0 }
 0x20b   :  { %v288_v49 = vadd.f32 %v462_v41, %v287_v48  ;;  %v299_v52 = vmax.f32 %v285_v45, 0.0 }
 0x20c   :  { %v302_v51 = vmax.f32 %v296_v47, 0.0 }
 0x20d   :  { %v300_v53 = vmax.f32 %v288_v49, 0.0 }
 0x20e   :  { %v304_v54 = vpack.c.bf16 %v302_v51, %v301_v50 }
 0x20f   :  { %v303_v55 = vpack.c.bf16 %v300_v53, %v299_v52 }
 0x211   :  { %566 = vmatprep.mubr.bf16.mxu0 %v303_v55 }
 0x212   :  { %567 = vmatmul.mubr.bf16.vlgmr.msra.gmra.mrb[4].mxu0 %v304_v54 }
 0x2e5   :  { %v568_v56 = vpop.f32.mrb[4].mxu0 }
 0x2e6   :  { %v420_v58 = vadd.f32 %v568_v56, %v173_v36  ;;  %v403_v59 = vpop.f32.mrb[5].mxu0 }
 0x2e7   :  { %v418_v60 = vadd.f32 %v403_v59, %v165_v34  ;;  %v569_v61 = vpop.f32.mrb[6].mxu0 }
 0x2e8   :  { %v429_v62 = vadd.f32 %v479_v57, %v420_v58  ;;  %v421_v63 = vadd.f32 %v569_v61, %v176_v32  ;;  %v406_v0 = vpop.f32.mrb[7].mxu0 }
 0x2e9   :  { %v427_v1 = vadd.f32 %v479_v57, %v418_v60  ;;  %v419_v2 = vadd.f32 %v406_v0, %v168_v35 }
 0x2ea   :  { %433 = vst [vmem:[#allocation8 + $0x10] sm:$0xff] %v429_v62  ;;  %v430_v3 = vadd.f32 %v479_v57, %v421_v63 }
 0x2eb   :  { %431 = vst [vmem:[#allocation8] sm:$0xff] %v427_v1  ;;  %v428_v4 = vadd.f32 %v479_v57, %v419_v2 }
 0x2ec   :  { %434 = vst [vmem:[#allocation8 + $0x18] sm:$0xff] %v430_v3 }
 0x2ed   :  { %432 = vst [vmem:[#allocation8 + $0x8] sm:$0xff] %v428_v4 }
 0x2ee   :  { %679 = shalt.err (!%p676_p0)
}
 0x2ef   :  { %s680_s27 = scalar_lea.hbm %s781_s3, 512 }
 0x2f0   :  { %p681_p1 = scmp.ne.s32.totalorder %s781_s3, %s680_s27  ;;  %p684_p2 = scmp.lt.u32.totalorder %s680_s27, %s781_s3 }
 0x2f2   :  { %p686_p3 = pnand %p684_p2, %p681_p1 }
 0x2f4   :  { %689 = shalt.err (!%p686_p3)
}
 0x2f5   :  { %446 = dma.vmem_to_hbm [thread:$0]  %s441_s23, 512, %s781_s3, [#allocation4], %s700_s1, %s700_s1, %s701_s9  }
 0x2f6   :  { %694 = dma.done.wait [#allocation4], 512  }
 0x2f7   :  { %695 = vsyncadd [#allocation4], 4294966784 }
 0x2f8   :  { %450 = vsyncpa [#allocation3], 1 }
 0x2f9   :  { %451 = vsyncpa [#allocation6], 1 }
 0x2fa   :  { %452 = vsyncpa [#allocation4], 1 }

</bundles_post_ra>
